<compile_context>
chip_gen: v6e
topology: v6e:2x2x1
jax: 0.10.0
libtpu: 0.0.40
codegen_flags: <defaults>
</compile_context>

<pallas_src>
import jax
import jax.numpy as jnp
from jax.experimental import pallas as pl
from jax.experimental.pallas import tpu as pltpu


def _plan_chunks(shape, itemsize, max_chunks=4, min_chunk_bytes=1 << 20):
    """Static chunking plan along the leading axis.

    Returns (chunks, num_sems) where chunks is a tuple of (start, rows) Python
    ints, or None for a single whole-array DMA.
    """
    if len(shape) == 0:
        return None, 1
    n = int(shape[0])
    row_bytes = int(itemsize)
    for d in shape[1:]:
        row_bytes *= int(d)
    total_bytes = n * row_bytes
    # Only bother chunking when each chunk would still be >= ~1 MiB.
    if n < 2 or total_bytes < 2 * min_chunk_bytes:
        return None, 1
    num = int(min(max_chunks, n, max(1, total_bytes // min_chunk_bytes)))
    base, rem = divmod(n, num)
    chunks, start = [], 0
    for c in range(num):
        size = base + (1 if c < rem else 0)
        chunks.append((start, size))
        start += size
    return tuple(chunks), num


def _make_hbm_copy_kernel(chunks):
    """Kernel body: direct HBM->HBM DMA(s); no VMEM staging at all."""

    def kernel(x_hbm, o_hbm, sem):
        if chunks is None:
            cp = pltpu.make_async_copy(x_hbm, o_hbm, sem.at[0])
            cp.start()
            cp.wait()
        else:
            # Issue all chunked DMAs back-to-back, then wait — lets multiple
            # DMA engines stream concurrently at the HBM roofline.
            descs = []
            for c, (start, rows) in enumerate(chunks):
                cp = pltpu.make_async_copy(
                    x_hbm.at[pl.ds(start, rows)],
                    o_hbm.at[pl.ds(start, rows)],
                    sem.at[c],
                )
                cp.start()
                descs.append(cp)
            for cp in descs:
                cp.wait()

    return kernel


def dummy_encoder_forward(x, edge_index, params=None, *, materialize=False,
                          donate=False):
    """Mirrors DummyEncoder.forward(x, edge_index) -> x.

    `edge_index` and `params` (the module's unused Linear(1,1) weight/bias)
    do not participate in the computation, exactly like the PyTorch module.

    materialize=False (default): return x directly — the zero-cost hot path.
    materialize=True: run a direct HBM->HBM DMA copy kernel (any rank/dtype).
    donate=True: alias x's buffer to the output (only set this when the caller
      actually donates x; otherwise XLA would insert a defensive full copy).
    """
    del edge_index, params  # unused by the reference forward

    if not materialize:
        return x

    itemsize = jnp.dtype(x.dtype).itemsize
    chunks, num_sems = _plan_chunks(x.shape, itemsize)
    kernel = _make_hbm_copy_kernel(chunks)

    nbytes = int(itemsize)
    for d in x.shape:
        nbytes *= int(d)

    return pl.pallas_call(
        kernel,
        out_shape=jax.ShapeDtypeStruct(x.shape, x.dtype),
        # Both operands stay in HBM; the body drives the DMA engines directly.
        in_specs=[pl.BlockSpec(memory_space=pl.ANY)],
        out_specs=pl.BlockSpec(memory_space=pl.ANY),
        scratch_shapes=[pltpu.SemaphoreType.DMA((num_sems,))],
        input_output_aliases=({0: 0} if donate else {}),
        cost_estimate=pl.CostEstimate(
            flops=0, transcendentals=0, bytes_accessed=2 * nbytes
        ),
    )(x)


def init_params():
    # Deterministic init of the module's (unused) Linear(1, 1) parameters.
    # Matches PyTorch shapes: weight (1, 1), bias (1,).
    w = jnp.full((1, 1), 0.5, dtype=jnp.float32)
    b = jnp.zeros((1,), dtype=jnp.float32)
    return {"linear_weight": w, "linear_bias": b}


if __name__ == "__main__":
    key = jax.random.PRNGKey(0)
    k_x, k_e, k_big = jax.random.split(key, 3)

    # Small, module-consistent shapes: node features (N, D) + an edge_index.
    num_nodes, hidden = 256, 128
    num_edges = 16

    x = jax.random.normal(k_x, (num_nodes, hidden), dtype=jnp.float32)
    edge_index = jax.random.randint(
        k_e, (2, num_edges), minval=0, maxval=num_nodes, dtype=jnp.int32
    )
    params = init_params()

    # 1) Recommended zero-cost path (pure passthrough, no kernel launched).
    x_fast = dummy_encoder_forward(x, edge_index, params)
    assert x_fast is x

    # 2) Materialized path, single whole-array HBM->HBM DMA (small input).
    #    donate=False here so x stays valid for the equality check below.
    x_out = dummy_encoder_forward(x, edge_index, params, materialize=True)
    jax.block_until_ready(x_out)
    assert x_out.shape == x.shape and x_out.dtype == x.dtype
    assert jnp.array_equal(x_out, x)

    # 3) Materialized path, chunked-DMA branch (array large enough to split
    #    into multiple concurrent HBM->HBM copies).
    x_big = jax.random.normal(k_big, (4096, 256), dtype=jnp.float32)  # 4 MiB
    y_big = dummy_encoder_forward(x_big, edge_index, params, materialize=True)
    jax.block_until_ready(y_big)
    assert jnp.array_equal(y_big, x_big)

    print("KERNEL_OK")
</pallas_src>

<mosaic_0001>
module attributes {stable_mosaic.version = 11 : i64} {
  func.func @kernel(%arg0: memref<256x128xf32, #tpu.memory_space<any>>, %arg1: memref<256x128xf32, #tpu.memory_space<any>>, %arg2: memref<1x!tpu.dma_semaphore, #tpu.memory_space<semaphore_mem>>) attributes {dimension_semantics = [], scalar_prefetch = 0 : i64, scratch_operands = 1 : i64, tpu.core_type = #tpu.core_type<tc>} {
    %c0_i32 = arith.constant 0 : i32
    %0 = tpu.memref_slice %arg2[%c0_i32] : memref<1x!tpu.dma_semaphore, #tpu.memory_space<semaphore_mem>> -> memref<1x!tpu.dma_semaphore, #tpu.memory_space<semaphore_mem>>
    %1 = tpu.memref_squeeze %0 : memref<1x!tpu.dma_semaphore, #tpu.memory_space<semaphore_mem>> -> memref<!tpu.dma_semaphore, #tpu.memory_space<semaphore_mem>>
    tpu.enqueue_dma source(%arg0 : memref<256x128xf32, #tpu.memory_space<any>>) target(%arg1 : memref<256x128xf32, #tpu.memory_space<any>>) target_semaphore(%1 : memref<!tpu.dma_semaphore, #tpu.memory_space<semaphore_mem>>)
    %c0_i32_0 = arith.constant 0 : i32
    %2 = tpu.memref_slice %arg2[%c0_i32_0] : memref<1x!tpu.dma_semaphore, #tpu.memory_space<semaphore_mem>> -> memref<1x!tpu.dma_semaphore, #tpu.memory_space<semaphore_mem>>
    %3 = tpu.memref_squeeze %2 : memref<1x!tpu.dma_semaphore, #tpu.memory_space<semaphore_mem>> -> memref<!tpu.dma_semaphore, #tpu.memory_space<semaphore_mem>>
    tpu.wait_dma2 semaphore(%3 : memref<!tpu.dma_semaphore, #tpu.memory_space<semaphore_mem>>) src(%arg0 : memref<256x128xf32, #tpu.memory_space<any>>) dst(%arg1 : memref<256x128xf32, #tpu.memory_space<any>>)
    return
  }
}

</mosaic_0001>

<bundles_post_ra>
// kernel: tpu_custom_call.1
= control target key start
LH: loop header
LB: loop body
LE: loop exit
PB: predicated region body
PF: predicated region fallthrough
CT: control target
= control target key end

     0   :  { %s28_s6 = smov [#allocation2]   ;;  %s29_s7 = smov 131072   ;;  %s47_s0 = inlined_call_operand.hbm [shape: f32[256,128], index: 0, kind: input, shape index: {}]   ;;  %s48_s1 = inlined_call_operand.hbm [shape: f32[256,128], index: 1, kind: output, shape index: {}]  }
   0x1   :  { %s30_s8 = smov 0  }
   0x2   :  { %12 = dma.general %s47_s0, 4096, %s48_s1, %s28_s6, %s29_s7, [#allocation4], %s30_s8, 0  }
   0x3   :  { %26 = dma.done.wait [#allocation2], 4096 }
   0x4   :  { %27 = vsyncadd [#allocation2], 4294963200 }
   0x5   :  { %16 = vsyncmov [#allocation2] }
   0x8   :  { %s17_s13 = vpop.sfrf %16 }
   0x9   :  { %p22_p0 = scmp.ne.s32.totalorder %s17_s13, 0 }
   0xb   :  { %21 = shalt.err (%p22_p0)  }

</bundles_post_ra>
